<compile_context>
chip_gen: v5e
topology: v5e:2x2
jax: 0.10.0
libtpu: 0.0.40
codegen_flags: <defaults>
</compile_context>

<pallas_src>
import math
import jax
import jax.numpy as jnp
from jax.experimental import pallas as pl
from jax.experimental.pallas import tpu as pltpu

# --------------------------- model hyper-parameters --------------------------
HEADS = 4
EMB = 32                 # embedding_dim
DK = EMB // HEADS        # 8
B = 2                    # batch
S = 8                    # sequence length
NEG_INF = -1e9           # matches masked_fill(mask == 0, -1e9)


# --------------------------------- kernel ------------------------------------
def mha_kernel(xcat_ref, mask_ref, wqkv_ref, bqkv_ref, wo_ref, bo_ref, out_ref):
    M = B * S

    # Fused QKV projection: one (M, 3E) x (3E, 3E) matmul against the
    # block-diagonal packed weight. 1/sqrt(DK) already folded into the Q block.
    qkv = jnp.dot(xcat_ref[...], wqkv_ref[...],
                  preferred_element_type=jnp.float32) + bqkv_ref[...]
    q = qkv[:, :EMB]
    k = qkv[:, EMB:2 * EMB]
    v = qkv[:, 2 * EMB:]

    def to_heads(x):
        # (M, E) -> (B*H, S, DK): lane slices + a major-axis stack; avoids a
        # minor-dim reshuffle / 4-D transpose relayout.
        hs = [x[:, h * DK:(h + 1) * DK].reshape(B, S, DK) for h in range(HEADS)]
        return jnp.stack(hs, axis=1).reshape(B * HEADS, S, DK)

    qh = to_heads(q)
    kh = to_heads(k)
    vh = to_heads(v)

    # One batched contraction over all (batch, head) pairs (no per-head loop).
    scores = jnp.einsum('bqd,bkd->bqk', qh, kh,
                        preferred_element_type=jnp.float32)        # (B*H, S, S)

    # Mask broadcast across heads (torch: mask of shape (B, 1, S, S)).
    mask_bh = jnp.broadcast_to(mask_ref[...][:, None, :, :],
                               (B, HEADS, S, S)).reshape(B * HEADS, S, S)
    scores = jnp.where(mask_bh == 0.0, jnp.float32(NEG_INF), scores)

    # Numerically-stable softmax; EUP reciprocal instead of a VPU divide.
    m = jnp.max(scores, axis=-1, keepdims=True)
    e = jnp.exp(scores - m)
    attn = e * pl.reciprocal(jnp.sum(e, axis=-1, keepdims=True), approx=True)

    ctx = jnp.einsum('bqk,bkd->bqd', attn, vh,
                     preferred_element_type=jnp.float32)           # (B*H, S, DK)

    # Back to (M, E) with torch's (batch, seq, head*dk) ordering.
    ctx4 = ctx.reshape(B, HEADS, S, DK)
    ctx_flat = jnp.concatenate(
        [ctx4[:, h].reshape(M, DK) for h in range(HEADS)], axis=-1)  # (M, E)

    # dropout = identity (inference); fused output projection (self.ff).
    out = jnp.dot(ctx_flat, wo_ref[...],
                  preferred_element_type=jnp.float32) + bo_ref[...]
    out_ref[...] = out.reshape(B, S, EMB)


# ------------------------------ params & wrapper ------------------------------
def _linear_params(key, fan_in, fan_out):
    # PyTorch nn.Linear-style init; weight stored transposed as (in, out).
    k1, k2 = jax.random.split(key)
    bound = 1.0 / math.sqrt(fan_in)
    w = jax.random.uniform(k1, (fan_in, fan_out), jnp.float32, -bound, bound)
    b = jax.random.uniform(k2, (1, fan_out), jnp.float32, -bound, bound)
    return w, b


def init_params(key):
    kq, kk, kv, ko = jax.random.split(key, 4)
    wq, bq = _linear_params(kq, EMB, EMB)
    wk, bk = _linear_params(kk, EMB, EMB)
    wv, bv = _linear_params(kv, EMB, EMB)
    wo, bo = _linear_params(ko, EMB, EMB)

    # Pack Q/K/V into one block-diagonal (3E, 3E) weight; fold 1/sqrt(DK)
    # into the Q block so the kernel never scales the score matrix.
    scale = 1.0 / math.sqrt(DK)
    wqkv = jnp.zeros((3 * EMB, 3 * EMB), jnp.float32)
    wqkv = wqkv.at[:EMB, :EMB].set(wq * scale)
    wqkv = wqkv.at[EMB:2 * EMB, EMB:2 * EMB].set(wk)
    wqkv = wqkv.at[2 * EMB:, 2 * EMB:].set(wv)
    bqkv = jnp.concatenate([bq * scale, bk, bv], axis=-1)          # (1, 3E)
    return {"wqkv": wqkv, "bqkv": bqkv, "wo": wo, "bo": bo}


def multi_head_attention(query, key, value, params, mask=None):
    """query/key/value: (B, S, EMB); mask: (B, S, S) or (B, 1, S, S), 0 = masked."""
    if mask is None:
        mask = jnp.ones((B, S, S), jnp.float32)
    mask = jnp.asarray(mask, jnp.float32).reshape(B, S, S)

    # Pack [q|k|v] along features so the kernel does a single fused QKV matmul.
    xcat = jnp.concatenate([query, key, value], axis=-1).reshape(B * S, 3 * EMB)

    vmem = pl.BlockSpec(memory_space=pltpu.MemorySpace.VMEM)
    return pl.pallas_call(
        mha_kernel,
        out_shape=jax.ShapeDtypeStruct((B, S, EMB), jnp.float32),
        in_specs=[vmem] * 6,
        out_specs=vmem,
    )(xcat, mask, params["wqkv"], params["bqkv"], params["wo"], params["bo"])


# ----------------------------------- main -------------------------------------
if __name__ == "__main__":
    root = jax.random.PRNGKey(0)
    kp, kq, kk, kv = jax.random.split(root, 4)

    params = init_params(kp)
    query = jax.random.normal(kq, (B, S, EMB), jnp.float32)
    key_t = jax.random.normal(kk, (B, S, EMB), jnp.float32)
    value_t = jax.random.normal(kv, (B, S, EMB), jnp.float32)

    # Deterministic key-padding mask: batch 0 keeps all keys, batch 1 masks
    # its last 3 key positions (broadcast across query rows and heads).
    lengths = jnp.array([S, S - 3], dtype=jnp.int32)
    key_keep = (jnp.arange(S)[None, :] < lengths[:, None]).astype(jnp.float32)
    mask = jnp.broadcast_to(key_keep[:, None, :], (B, S, S))

    out = multi_head_attention(query, key_t, value_t, params, mask)
    jax.block_until_ready(out)

    assert out.shape == (B, S, EMB)
    assert bool(jnp.all(jnp.isfinite(out)))
    print("KERNEL_OK")
</pallas_src>

<mosaic_0001>
module attributes {stable_mosaic.version = 11 : i64} {
  func.func @mha_kernel(%arg0: memref<16x96xf32, #tpu.memory_space<vmem>>, %arg1: memref<2x8x8xf32, #tpu.memory_space<vmem>>, %arg2: memref<96x96xf32, #tpu.memory_space<vmem>>, %arg3: memref<1x96xf32, #tpu.memory_space<vmem>>, %arg4: memref<32x32xf32, #tpu.memory_space<vmem>>, %arg5: memref<1x32xf32, #tpu.memory_space<vmem>>, %arg6: memref<2x8x32xf32, #tpu.memory_space<vmem>>) attributes {dimension_semantics = [], scalar_prefetch = 0 : i64, scratch_operands = 0 : i64, tpu.core_type = #tpu.core_type<tc>} {
    %c0 = arith.constant 0 : index
    %c0_0 = arith.constant 0 : index
    %0 = vector.load %arg0[%c0, %c0_0] : memref<16x96xf32, #tpu.memory_space<vmem>>, vector<16x96xf32>
    %c0_1 = arith.constant 0 : index
    %c0_2 = arith.constant 0 : index
    %1 = vector.load %arg2[%c0_1, %c0_2] : memref<96x96xf32, #tpu.memory_space<vmem>>, vector<96x96xf32>
    %cst = arith.constant dense<0.000000e+00> : vector<16x96xf32>
    %2 = tpu.matmul %0, %1, %cst {dimension_numbers = #tpu.dot_dimension_numbers<[1], [0], [0], [1], [0, 0, 1, 1], [], []>} : vector<16x96xf32>, vector<96x96xf32>, vector<16x96xf32> -> vector<16x96xf32>
    %c0_3 = arith.constant 0 : index
    %c0_4 = arith.constant 0 : index
    %3 = vector.load %arg3[%c0_3, %c0_4] : memref<1x96xf32, #tpu.memory_space<vmem>>, vector<1x96xf32>
    %4 = vector.broadcast %3 : vector<1x96xf32> to vector<16x96xf32>
    %5 = arith.addf %2, %4 : vector<16x96xf32>
    %6 = vector.extract_strided_slice %5 {offsets = [0, 0], sizes = [16, 32], strides = [1, 1]} : vector<16x96xf32> to vector<16x32xf32>
    %7 = vector.extract_strided_slice %5 {offsets = [0, 32], sizes = [16, 32], strides = [1, 1]} : vector<16x96xf32> to vector<16x32xf32>
    %8 = vector.extract_strided_slice %5 {offsets = [0, 64], sizes = [16, 32], strides = [1, 1]} : vector<16x96xf32> to vector<16x32xf32>
    %9 = vector.extract_strided_slice %6 {offsets = [0, 0], sizes = [16, 8], strides = [1, 1]} : vector<16x32xf32> to vector<16x8xf32>
    %10 = vector.shape_cast %9 : vector<16x8xf32> to vector<2x8x8xf32>
    %11 = vector.extract_strided_slice %6 {offsets = [0, 8], sizes = [16, 8], strides = [1, 1]} : vector<16x32xf32> to vector<16x8xf32>
    %12 = vector.shape_cast %11 : vector<16x8xf32> to vector<2x8x8xf32>
    %13 = vector.extract_strided_slice %6 {offsets = [0, 16], sizes = [16, 8], strides = [1, 1]} : vector<16x32xf32> to vector<16x8xf32>
    %14 = vector.shape_cast %13 : vector<16x8xf32> to vector<2x8x8xf32>
    %15 = vector.extract_strided_slice %6 {offsets = [0, 24], sizes = [16, 8], strides = [1, 1]} : vector<16x32xf32> to vector<16x8xf32>
    %16 = vector.shape_cast %15 : vector<16x8xf32> to vector<2x8x8xf32>
    %17 = vector.shape_cast %10 : vector<2x8x8xf32> to vector<2x1x8x8xf32>
    %18 = vector.shape_cast %12 : vector<2x8x8xf32> to vector<2x1x8x8xf32>
    %19 = vector.shape_cast %14 : vector<2x8x8xf32> to vector<2x1x8x8xf32>
    %20 = vector.shape_cast %16 : vector<2x8x8xf32> to vector<2x1x8x8xf32>
    %21 = tpu.concatenate %17, %18, %19, %20 in 1 : vector<2x1x8x8xf32>, vector<2x1x8x8xf32>, vector<2x1x8x8xf32>, vector<2x1x8x8xf32> -> vector<2x4x8x8xf32>
    %22 = vector.shape_cast %21 : vector<2x4x8x8xf32> to vector<8x8x8xf32>
    %23 = vector.extract_strided_slice %7 {offsets = [0, 0], sizes = [16, 8], strides = [1, 1]} : vector<16x32xf32> to vector<16x8xf32>
    %24 = vector.shape_cast %23 : vector<16x8xf32> to vector<2x8x8xf32>
    %25 = vector.extract_strided_slice %7 {offsets = [0, 8], sizes = [16, 8], strides = [1, 1]} : vector<16x32xf32> to vector<16x8xf32>
    %26 = vector.shape_cast %25 : vector<16x8xf32> to vector<2x8x8xf32>
    %27 = vector.extract_strided_slice %7 {offsets = [0, 16], sizes = [16, 8], strides = [1, 1]} : vector<16x32xf32> to vector<16x8xf32>
    %28 = vector.shape_cast %27 : vector<16x8xf32> to vector<2x8x8xf32>
    %29 = vector.extract_strided_slice %7 {offsets = [0, 24], sizes = [16, 8], strides = [1, 1]} : vector<16x32xf32> to vector<16x8xf32>
    %30 = vector.shape_cast %29 : vector<16x8xf32> to vector<2x8x8xf32>
    %31 = vector.shape_cast %24 : vector<2x8x8xf32> to vector<2x1x8x8xf32>
    %32 = vector.shape_cast %26 : vector<2x8x8xf32> to vector<2x1x8x8xf32>
    %33 = vector.shape_cast %28 : vector<2x8x8xf32> to vector<2x1x8x8xf32>
    %34 = vector.shape_cast %30 : vector<2x8x8xf32> to vector<2x1x8x8xf32>
    %35 = tpu.concatenate %31, %32, %33, %34 in 1 : vector<2x1x8x8xf32>, vector<2x1x8x8xf32>, vector<2x1x8x8xf32>, vector<2x1x8x8xf32> -> vector<2x4x8x8xf32>
    %36 = vector.shape_cast %35 : vector<2x4x8x8xf32> to vector<8x8x8xf32>
    %37 = vector.extract_strided_slice %8 {offsets = [0, 0], sizes = [16, 8], strides = [1, 1]} : vector<16x32xf32> to vector<16x8xf32>
    %38 = vector.shape_cast %37 : vector<16x8xf32> to vector<2x8x8xf32>
    %39 = vector.extract_strided_slice %8 {offsets = [0, 8], sizes = [16, 8], strides = [1, 1]} : vector<16x32xf32> to vector<16x8xf32>
    %40 = vector.shape_cast %39 : vector<16x8xf32> to vector<2x8x8xf32>
    %41 = vector.extract_strided_slice %8 {offsets = [0, 16], sizes = [16, 8], strides = [1, 1]} : vector<16x32xf32> to vector<16x8xf32>
    %42 = vector.shape_cast %41 : vector<16x8xf32> to vector<2x8x8xf32>
    %43 = vector.extract_strided_slice %8 {offsets = [0, 24], sizes = [16, 8], strides = [1, 1]} : vector<16x32xf32> to vector<16x8xf32>
    %44 = vector.shape_cast %43 : vector<16x8xf32> to vector<2x8x8xf32>
    %45 = vector.shape_cast %38 : vector<2x8x8xf32> to vector<2x1x8x8xf32>
    %46 = vector.shape_cast %40 : vector<2x8x8xf32> to vector<2x1x8x8xf32>
    %47 = vector.shape_cast %42 : vector<2x8x8xf32> to vector<2x1x8x8xf32>
    %48 = vector.shape_cast %44 : vector<2x8x8xf32> to vector<2x1x8x8xf32>
    %49 = tpu.concatenate %45, %46, %47, %48 in 1 : vector<2x1x8x8xf32>, vector<2x1x8x8xf32>, vector<2x1x8x8xf32>, vector<2x1x8x8xf32> -> vector<2x4x8x8xf32>
    %50 = vector.shape_cast %49 : vector<2x4x8x8xf32> to vector<8x8x8xf32>
    "tpu.trace_start"() <{level = 10 : i32, message = "bqd,bkd->bqk"}> : () -> ()
    %cst_5 = arith.constant dense<0.000000e+00> : vector<8x8x8xf32>
    %51 = tpu.matmul %22, %36, %cst_5 {dimension_numbers = #tpu.dot_dimension_numbers<[2], [2], [1], [1], [0, 0, 0, 1, 1, 1], [0], [0]>} : vector<8x8x8xf32>, vector<8x8x8xf32>, vector<8x8x8xf32> -> vector<8x8x8xf32>
    "tpu.trace_stop"() : () -> ()
    %c0_6 = arith.constant 0 : index
    %c0_7 = arith.constant 0 : index
    %c0_8 = arith.constant 0 : index
    %52 = vector.load %arg1[%c0_6, %c0_7, %c0_8] : memref<2x8x8xf32, #tpu.memory_space<vmem>>, vector<2x8x8xf32>
    %53 = vector.shape_cast %52 : vector<2x8x8xf32> to vector<2x1x8x8xf32>
    %54 = vector.shape_cast %53 : vector<2x1x8x8xf32> to vector<2x1x8x8xf32>
    %55 = vector.broadcast %54 : vector<2x1x8x8xf32> to vector<2x4x8x8xf32>
    %56 = vector.shape_cast %55 : vector<2x4x8x8xf32> to vector<8x8x8xf32>
    %cst_9 = arith.constant 0.000000e+00 : f32
    %57 = vector.broadcast %cst_9 : f32 to vector<8x8x8xf32>
    %58 = arith.cmpf oeq, %56, %57 : vector<8x8x8xf32>
    %cst_10 = arith.constant -1.000000e+09 : f32
    %59 = vector.broadcast %cst_10 : f32 to vector<8x8x8xf32>
    %60 = arith.select %58, %59, %51 : vector<8x8x8xi1>, vector<8x8x8xf32>
    %cst_11 = arith.constant dense<0xFF800000> : vector<8x8xf32>
    %61 = vector.multi_reduction <maximumf>, %60, %cst_11 [2] : vector<8x8x8xf32> to vector<8x8xf32>
    %62 = vector.shape_cast %61 : vector<8x8xf32> to vector<8x8x1xf32>
    %63 = vector.broadcast %62 : vector<8x8x1xf32> to vector<8x8x8xf32>
    %64 = arith.subf %60, %63 : vector<8x8x8xf32>
    %65 = math.exp %64 : vector<8x8x8xf32>
    %cst_12 = arith.constant dense<0.000000e+00> : vector<8x8xf32>
    %66 = vector.multi_reduction <add>, %65, %cst_12 [2] : vector<8x8x8xf32> to vector<8x8xf32>
    %67 = vector.shape_cast %66 : vector<8x8xf32> to vector<8x8x1xf32>
    %68 = tpu.reciprocal %67 {approx = true} : vector<8x8x1xf32> -> vector<8x8x1xf32>
    %69 = vector.broadcast %68 : vector<8x8x1xf32> to vector<8x8x8xf32>
    %70 = arith.mulf %65, %69 : vector<8x8x8xf32>
    "tpu.trace_start"() <{level = 10 : i32, message = "bqk,bkd->bqd"}> : () -> ()
    %cst_13 = arith.constant dense<0.000000e+00> : vector<8x8x8xf32>
    %71 = tpu.matmul %70, %50, %cst_13 {dimension_numbers = #tpu.dot_dimension_numbers<[2], [1], [1], [2], [0, 0, 0, 1, 1, 2], [0], [0]>} : vector<8x8x8xf32>, vector<8x8x8xf32>, vector<8x8x8xf32> -> vector<8x8x8xf32>
    "tpu.trace_stop"() : () -> ()
    %72 = vector.shape_cast %71 : vector<8x8x8xf32> to vector<2x4x8x8xf32>
    %73 = vector.extract_strided_slice %72 {offsets = [0, 0, 0, 0], sizes = [2, 1, 8, 8], strides = [1, 1, 1, 1]} : vector<2x4x8x8xf32> to vector<2x1x8x8xf32>
    %74 = vector.shape_cast %73 : vector<2x1x8x8xf32> to vector<2x8x8xf32>
    %75 = vector.shape_cast %74 : vector<2x8x8xf32> to vector<16x8xf32>
    %76 = vector.extract_strided_slice %72 {offsets = [0, 1, 0, 0], sizes = [2, 1, 8, 8], strides = [1, 1, 1, 1]} : vector<2x4x8x8xf32> to vector<2x1x8x8xf32>
    %77 = vector.shape_cast %76 : vector<2x1x8x8xf32> to vector<2x8x8xf32>
    %78 = vector.shape_cast %77 : vector<2x8x8xf32> to vector<16x8xf32>
    %79 = vector.extract_strided_slice %72 {offsets = [0, 2, 0, 0], sizes = [2, 1, 8, 8], strides = [1, 1, 1, 1]} : vector<2x4x8x8xf32> to vector<2x1x8x8xf32>
    %80 = vector.shape_cast %79 : vector<2x1x8x8xf32> to vector<2x8x8xf32>
    %81 = vector.shape_cast %80 : vector<2x8x8xf32> to vector<16x8xf32>
    %82 = vector.extract_strided_slice %72 {offsets = [0, 3, 0, 0], sizes = [2, 1, 8, 8], strides = [1, 1, 1, 1]} : vector<2x4x8x8xf32> to vector<2x1x8x8xf32>
    %83 = vector.shape_cast %82 : vector<2x1x8x8xf32> to vector<2x8x8xf32>
    %84 = vector.shape_cast %83 : vector<2x8x8xf32> to vector<16x8xf32>
    %85 = tpu.concatenate %75, %78, %81, %84 in 1 : vector<16x8xf32>, vector<16x8xf32>, vector<16x8xf32>, vector<16x8xf32> -> vector<16x32xf32>
    %c0_14 = arith.constant 0 : index
    %c0_15 = arith.constant 0 : index
    %86 = vector.load %arg4[%c0_14, %c0_15] : memref<32x32xf32, #tpu.memory_space<vmem>>, vector<32x32xf32>
    %cst_16 = arith.constant dense<0.000000e+00> : vector<16x32xf32>
    %87 = tpu.matmul %85, %86, %cst_16 {dimension_numbers = #tpu.dot_dimension_numbers<[1], [0], [0], [1], [0, 0, 1, 1], [], []>} : vector<16x32xf32>, vector<32x32xf32>, vector<16x32xf32> -> vector<16x32xf32>
    %c0_17 = arith.constant 0 : index
    %c0_18 = arith.constant 0 : index
    %88 = vector.load %arg5[%c0_17, %c0_18] : memref<1x32xf32, #tpu.memory_space<vmem>>, vector<1x32xf32>
    %89 = vector.broadcast %88 : vector<1x32xf32> to vector<16x32xf32>
    %90 = arith.addf %87, %89 : vector<16x32xf32>
    %91 = vector.shape_cast %90 : vector<16x32xf32> to vector<2x8x32xf32>
    %c0_19 = arith.constant 0 : index
    %c0_20 = arith.constant 0 : index
    %c0_21 = arith.constant 0 : index
    %92 = vector.load %arg6[%c0_19, %c0_20, %c0_21] : memref<2x8x32xf32, #tpu.memory_space<vmem>>, vector<2x8x32xf32>
    tpu.vector_store %arg6[%c0_19, %c0_20, %c0_21], %91 {strides = array<i32>} : memref<2x8x32xf32, #tpu.memory_space<vmem>>, vector<2x8x32xf32>,
    return
  }
}

</mosaic_0001>

<bundles_post_ra>
// kernel: tpu_custom_call.1
= control target key start
LH: loop header
LB: loop body
LE: loop exit
PB: predicated region body
PF: predicated region fallthrough
CT: control target
= control target key end

     0   :  { %11 = vsyncpa [#allocation3], 0  ;;  %s1182_s0 = inlined_call_operand.hbm [shape: f32[16,96], index: 0, kind: input, shape index: {}]   ;;  %s1183_s1 = inlined_call_operand.hbm [shape: f32[2,8,8], index: 1, kind: input, shape index: {}]   ;;  %s1184_s2 = inlined_call_operand.hbm [shape: f32[96,96], index: 2, kind: input, shape index: {}]   ;;  %s1185_s3 = inlined_call_operand.vmem [shape: f32[1,96], index: 3, kind: input, shape index: {}]   ;;  %s1186_s4 = inlined_call_operand.hbm [shape: f32[32,32], index: 4, kind: input, shape index: {}]   ;;  %s1187_s5 = inlined_call_operand.vmem [shape: f32[1,32], index: 5, kind: input, shape index: {}]   ;;  %s1188_s6 = inlined_call_operand.hbm [shape: f32[2,8,32], index: 6, kind: output, shape index: {}]  }
   0x1   :  { %12 = vsyncpa [#allocation6], 0 }
   0x2   :  { %13 = vsyncpa [#allocation9], 0 }
   0x3   :  { %14 = vsyncpa [#allocation4], 0  ;;  %s32_s23 = sshll.u32 %s1183_s1, 4  ;;  %s978_s24 = smov [#allocation5]   ;;  %s33_s23 = int_to_ptr.hbm [resolvable:$true] %s32_s23 }
   0x4   :  { %s34_s25 = sshll.u32 %s978_s24, 4  ;;  %s19_s28 = sshll.u32 %s1182_s0, 4  ;;  %s35_s25 = int_to_ptr.vmem [resolvable:$true] %s34_s25  ;;  %s20_s28 = int_to_ptr.hbm [resolvable:$true] %s19_s28 }
   0x5   :  { %s979_s29 = smov 128   ;;  %s980_s30 = smov 8  }
   0x6   :  { %40 = dma.hbm_to_vmem [thread:$0]  %s33_s23, 256, %s35_s25, [#allocation6], %s979_s29, %s979_s29, %s980_s30  }
   0x7   :  { %s981_s7 = smov [#allocation2]   ;;  %s45_s1 = sshll.u32 %s1184_s2, 4  ;;  %s46_s1 = int_to_ptr.hbm [resolvable:$true] %s45_s1 }
   0x8   :  { %s21_s8 = sshll.u32 %s981_s7, 4  ;;  %s60_s12 = sshll.u32 %s1186_s4, 4  ;;  %s22_s8 = int_to_ptr.vmem [resolvable:$true] %s21_s8  ;;  %s61_s12 = int_to_ptr.hbm [resolvable:$true] %s60_s12 }
   0x9   :  { %27 = dma.hbm_to_vmem [thread:$0]  %s20_s28, 256, %s22_s8, [#allocation3], %s979_s29, %s979_s29, %s980_s30  }
   0xa   :  { %s982_s13 = smov [#allocation7]   ;;  %s983_s15 = smov [#allocation8]  }
   0xb   :  { %s47_s14 = sshll.u32 %s982_s13, 4  ;;  %s62_s2 = sshll.u32 %s983_s15, 4  ;;  %s48_s14 = int_to_ptr.vmem [resolvable:$true] %s47_s14  ;;  %s63_s2 = int_to_ptr.vmem [resolvable:$true] %s62_s2 }
   0xc   :  { %53 = dma.hbm_to_vmem [thread:$0]  %s46_s1, 1536, %s48_s14, [#allocation6], %s979_s29, %s979_s29, %s980_s30  }
   0xd   :  { %68 = dma.hbm_to_vmem [thread:$0]  %s61_s12, 512, %s63_s2, [#allocation9], %s979_s29, %s979_s29, %s980_s30  }
   0xe   :  { %970 = dma.done.wait [#allocation3], 256  }
   0xf   :  { %971 = vsyncadd [#allocation3], 4294967040 }
  0x10   :  { %972 = dma.done.wait [#allocation6], 1792  }
  0x11   :  { %973 = vsyncadd [#allocation6], 4294965504 }
  0x12   :  { %974 = dma.done.wait [#allocation9], 512  }
  0x13   :  { %975 = vsyncadd [#allocation9], 4294966784  ;;  %v100_v0 = vld [vmem:[#allocation7 + $0x58] sm:$0xff]  ;;  %v99_v1 = vld [vmem:[#allocation7 + $0x50] sm:$0xff]  ;;  %vm105_vm0 = vcmask 785408   ;;  %s984_s17 = smov 104  }
  0x14   :  { %116 = vmatpush.msra.mxu0 %v100_v0  ;;  %v98_v2 = vld [vmem:[#allocation7 + $0x48] sm:$0xff]  ;;  %v97_v3 = vld [vmem:[#allocation7 + $0x40] sm:$0xff]  ;;  %v96_v4 = vld [vmem:[#allocation7 + $0x38] sm:$0xff]  ;;  %s985_s18 = smov 120   ;;  %s986_s19 = smov 112   ;;  %vm151_vm1 = vcmask 64512  }
  0x15   :  { %v95_v5 = vld [vmem:[#allocation7 + $0x30] sm:$0xff]  ;;  %v94_v6 = vld [vmem:[#allocation7 + $0x28] sm:$0xff]  ;;  %v93_v7 = vld [vmem:[#allocation7 + $0x20] sm:$0xff]  ;;  %s988_s20 = smov 64   ;;  %s989_s21 = smov 16   ;;  %vm692_vm4 = vcmask 130048  }
  0x16   :  { %117 = vmatpush.msra.mxu0 %v99_v1  ;;  %v92_v8 = vld [vmem:[#allocation7 + $0x18] sm:$0xff]  ;;  %v91_v9 = vld [vmem:[#allocation7 + $0x10] sm:$0xff]  ;;  %v90_v10 = vld [vmem:[#allocation7 + $0x8] sm:$0xff]  ;;  %s990_s22 = smov 24   ;;  %vm695_vm5 = vcmask 195584   ;;  %vm706_vm6 = vcmask 261120  }
  0x17   :  { %v89_v11 = vld [vmem:[#allocation7] sm:$0xff]  ;;  %v88_v13 = vld [vmem:[#allocation2 + $0x8] sm:$0xff]  ;;  %v358_v33 = vld [vmem:[#allocation5] sm:$0xff]  ;;  %s991_s25 = smov [#allocation10]   ;;  %s744_s7 = sshll.u32 %s1188_s6, 4  ;;  %s745_s7 = int_to_ptr.hbm [resolvable:$true] %s744_s7 }
  0x18   :  { %118 = vmatpush.msra.mxu0 %v98_v2  ;;  %v87_v12 = vld [vmem:[#allocation2] sm:$0xff]  ;;  %vm360_vm2 = vcmp.eq.f32.partialorder %v358_v33, 0.0  ;;  %v359_v43 = vld [vmem:[#allocation5 + $0x8] sm:$0xff]  ;;  %s742_s26 = sshll.u32 %s991_s25, 4  ;;  %s743_s26 = int_to_ptr.vmem [resolvable:$true] %s742_s26 }
  0x19   :  { %v816_v14 = vld [vmem:[%s1185_s3] ss:$0 sm:$0xff]  ;;  %s987_s3 = smov 96   ;;  %vm361_vm3 = vcmp.eq.f32.partialorder %v359_v43, 0.0 }
  0x1a   :  { %119 = vmatpush.msra.mxu0 %v97_v3 }
  0x1c   :  { %120 = vmatpush.msra.mxu0 %v96_v4 }
  0x1e   :  { %121 = vmatpush.msra.mxu0 %v95_v5 }
  0x20   :  { %122 = vmatpush.msra.mxu0 %v94_v6 }
  0x22   :  { %123 = vmatpush.msra.mxu0 %v93_v7 }
  0x24   :  { %124 = vmatpush.msra.mxu0 %v92_v8 }
  0x26   :  { %125 = vmatpush.msra.mxu0 %v91_v9 }
  0x28   :  { %126 = vmatpush.msra.mxu0 %v90_v10 }
  0x2a   :  { %127 = vmatpush.msra.mxu0 %v89_v11 }
  0x2b   :  { %759 = vmatmul.msk.f32.vlgmr.msra.gmra.mxu0 %vm105_vm0, %v87_v12 }
  0x33   :  { %760 = vmatmul.msk.f32.gmra.mxu0 %vm105_vm0, %v88_v13 }
  0xa8   :  { %v129_v15 = vpop.f32.mrf.mxu0 }
  0xa9   :  { %v1054_v16 = vadd.f32 %v816_v14, %v129_v15 }
  0xab   :  { %145 = vrot.lane.b32.xlu1 %v1054_v16, %s984_s17  ;;  %137 = vrot.lane.b32.xlu0 %v1054_v16, %s985_s18 }
  0xb0   :  { %v132_v17 = vpop.f32.mrf.mxu0 }
  0xb1   :  { %v1058_v18 = vadd.f32 %v816_v14, %v132_v17 }
  0xb3   :  { %139 = vrot.lane.b32.xlu1 %v1058_v18, %s985_s18  ;;  %141 = vrot.lane.b32.xlu0 %v1054_v16, %s986_s19 }
  0xb4   :  { %143 = vrot.lane.b32.xlu2 %v1058_v18, %s986_s19 }
  0xbb   :  { %149 = vrot.lane.b32.xlu0 %v1054_v16, %s987_s3 }
  0xbc   :  { %147 = vrot.lane.b32.xlu2 %v1058_v18, %s984_s17 }
 0x10e   :  { %v1071_v21 = vpop.permute.xlu2 %143 }
 0x116   :  { %v1078_v23 = vpop.permute.xlu2 %147 }
 0x11d   :  { %v1065_v19 = vpop.permute.xlu1 %145  ;;  %v1067_v20 = vpop.permute.xlu0 %137 }
 0x11e   :  { %228 = vrot.lane.b32.xlu0 %v1065_v19, %s987_s3  ;;  %176 = vrot.lane.b32.xlu1 %v1067_v20, %s987_s3 }
 0x125   :  { %v1073_v22 = vpop.permute.xlu0 %141  ;;  %v1080_v25 = vpop.permute.xlu1 %139 }
 0x126   :  { %306 = vrot.lane.b32.xlu0 %v1071_v21, %s987_s3  ;;  %254 = vrot.lane.b32.xlu1 %v1058_v18, %s987_s3  ;;  %v801_v62 = vpack.i.bf16 %v1073_v22, %v1054_v16 }
 0x127   :  { %202 = vrot.lane.b32.xlu2 %v1073_v22, %s987_s3 }
 0x12d   :  { %v150_v24 = vpop.permute.xlu0 %149 }
 0x12e   :  { %332 = vrot.lane.b32.xlu1 %v1078_v23, %s987_s3  ;;  %761 = vmatpush.xpose.msk.msra.mxu2 %vm151_vm1, %v150_v24 }
 0x12f   :  { %280 = vrot.lane.b32.xlu2 %v1080_v25, %s987_s3 }
 0x131   :  { %762 = vmatmul.msk.f32.vlgmr.msra.gmra.mxu2 %vm151_vm1, %v1054_v16 }
 0x181   :  { %v203_v26 = vpop.permute.xlu2 %202 }
 0x182   :  { %765 = vmatpush.xpose.msk.msra.mxu3 %vm151_vm1, %v203_v26 }
 0x185   :  { %766 = vmatmul.msk.f32.vlgmr.msra.gmra.mxu3 %vm151_vm1, %v1073_v22 }
 0x189   :  { %v281_v27 = vpop.permute.xlu2 %280 }
 0x18a   :  { %771 = vmatpush.xpose.msk.msrb.mxu3 %vm151_vm1, %v281_v27 }
 0x18d   :  { %772 = vmatmul.msk.f32.vlgmr.msrb.gmra.mxu3 %vm151_vm1, %v1080_v25 }
 0x190   :  { %v177_v28 = vpop.permute.xlu1 %176  ;;  %v229_v29 = vpop.permute.xlu0 %228 }
 0x191   :  { %763 = vmatpush.xpose.msk.msrb.mxu2 %vm151_vm1, %v177_v28  ;;  %767 = vmatpush.xpose.msk.msra.mxu1 %vm151_vm1, %v229_v29  ;;  %v811_v29 = vpack.i.bf16 %v1071_v21, %v1080_v25 }
 0x194   :  { %764 = vmatmul.msk.f32.vlgmr.msrb.gmra.mxu2 %vm151_vm1, %v1067_v20  ;;  %768 = vmatmul.msk.f32.vlgmr.msra.gmra.mxu1 %vm151_vm1, %v1065_v19 }
 0x198   :  { %v255_v30 = vpop.permute.xlu1 %254  ;;  %v307_v31 = vpop.permute.xlu0 %306 }
 0x199   :  { %769 = vmatpush.xpose.msk.msra.mxu2 %vm151_vm1, %v255_v30  ;;  %773 = vmatpush.xpose.msk.msrb.mxu1 %vm151_vm1, %v307_v31 }
 0x19c   :  { %770 = vmatmul.msk.f32.vlgmr.msra.gmra.mxu2 %vm151_vm1, %v1058_v18  ;;  %774 = vmatmul.msk.f32.vlgmr.msrb.gmra.mxu1 %vm151_vm1, %v1071_v21 }
 0x1a0   :  { %v333_v32 = vpop.permute.xlu1 %332 }
 0x1a1   :  { %775 = vmatpush.xpose.msk.msrb.mxu2 %vm151_vm1, %v333_v32 }
 0x1a4   :  { %776 = vmatmul.msk.f32.vlgmr.msrb.gmra.mxu2 %vm151_vm1, %v1078_v23 }
 0x1b4   :  { %v173_v34 = vpop.f32.mrf.mxu2 }
 0x1b5   :  { %v362_v35 = vsel %vm360_vm2, -1e+09, %v173_v34 }
 0x1b6   :  { %v370_v36 = vsel %vm151_vm1, %v362_v35, -inf }
 0x1b7   :  { %371 = vmax.xlane.f32.xlu2 %v370_v36 }
 0x208   :  { %v225_v37 = vpop.f32.mrf.mxu3 }
 0x209   :  { %v364_v38 = vsel %vm360_vm2, -1e+09, %v225_v37 }
 0x20a   :  { %v376_v39 = vsel %vm151_vm1, %v364_v38, -inf }
 0x20b   :  { %377 = vmax.xlane.f32.xlu0 %v376_v39 }
 0x210   :  { %v303_v49 = vpop.f32.mrf.mxu3 }
 0x211   :  { %v251_v40 = vpop.f32.mrf.mxu1  ;;  %v367_v51 = vsel %vm361_vm3, -1e+09, %v303_v49 }
 0x212   :  { %v365_v41 = vsel %vm360_vm2, -1e+09, %v251_v40  ;;  %v385_v54 = vsel %vm151_vm1, %v367_v51, -inf }
 0x213   :  { %v379_v42 = vsel %vm151_vm1, %v365_v41, -inf }
 0x214   :  { %380 = vmax.xlane.f32.xlu1 %v379_v42 }
 0x217   :  { %v199_v44 = vpop.f32.mrf.mxu2 }
 0x218   :  { %v363_v45 = vsel %vm360_vm2, -1e+09, %v199_v44  ;;  %v806_v44 = vpack.i.bf16 %v1067_v20, %v1065_v19 }
 0x219   :  { %v329_v46 = vpop.f32.mrf.mxu1  ;;  %v373_v47 = vsel %vm151_vm1, %v363_v45, -inf }
 0x21a   :  { %v368_v48 = vsel %vm361_vm3, -1e+09, %v329_v46  ;;  %374 = vmax.xlane.f32.xlu2 %v373_v47 }
 0x21b   :  { %v388_v50 = vsel %vm151_vm1, %v368_v48, -inf }
 0x21c   :  { %389 = vmax.xlane.f32.xlu0 %v388_v50 }
 0x21f   :  { %v277_v52 = vpop.f32.mrf.mxu2 }
 0x220   :  { %v1116_v53 = vsel %vm361_vm3, -1e+09, %v277_v52 }
 0x221   :  { %v382_v55 = vsel %vm151_vm1, %v1116_v53, -inf }
 0x222   :  { %386 = vmax.xlane.f32.xlu2 %v385_v54  ;;  %383 = vmax.xlane.f32.xlu1 %v382_v55 }
 0x227   :  { %v355_v56 = vpop.f32.mrf.mxu2 }
 0x228   :  { %v369_v57 = vsel %vm361_vm3, -1e+09, %v355_v56 }
 0x229   :  { %v391_v58 = vsel %vm151_vm1, %v369_v57, -inf }
 0x22a   :  { %v372_v59 = vpop.xlane.xlu2 %371  ;;  %392 = vmax.xlane.f32.xlu1 %v391_v58 }
 0x22b   :  { %v394_v60 = vsub.f32 %v362_v35, %v372_v59 }
 0x22d   :  { %v402_v61 = vmul.f32 1.442695, %v394_v60 }
 0x22f   :  { %818 = vpow2.f32 %v402_v61 }
 0x230   :  { %802 = vrot.lane.b32.xlu0 %v801_v62, %s988_s20 }
 0x235   :  { %v819_v63 = vpop.eup %818 }
 0x236   :  { %v418_v0 = vsel %vm151_vm1, %v819_v63, 0.0 }
 0x237   :  { %419 = vadd.xlane.f32.xlu2 %v418_v0 }
 0x27e   :  { %v378_v1 = vpop.xlane.xlu0 %377 }
 0x27f   :  { %v396_v2 = vsub.f32 %v364_v38, %v378_v1 }
 0x281   :  { %v406_v3 = vmul.f32 1.442695, %v396_v2 }
 0x283   :  { %820 = vpow2.f32 %v406_v3 }
 0x287   :  { %v381_v4 = vpop.xlane.xlu1 %380 }
 0x288   :  { %v397_v5 = vsub.f32 %v365_v41, %v381_v4 }
 0x289   :  { %v821_v6 = vpop.eup %820 }
 0x28a   :  { %v408_v7 = vmul.f32 1.442695, %v397_v5  ;;  %v424_v8 = vsel %vm151_vm1, %v821_v6, 0.0 }
 0x28b   :  { %425 = vadd.xlane.f32.xlu0 %v424_v8 }
 0x28c   :  { %822 = vpow2.f32 %v408_v7 }
 0x28d   :  { %v375_v9 = vpop.xlane.xlu2 %374 }
 0x28e   :  { %v395_v10 = vsub.f32 %v363_v45, %v375_v9 }
 0x28f   :  { %v390_v11 = vpop.xlane.xlu0 %389 }
 0x290   :  { %v404_v12 = vmul.f32 1.442695, %v395_v10  ;;  %v400_v13 = vsub.f32 %v368_v48, %v390_v11 }
 0x292   :  { %v1128_v14 = vpop.eup %822  ;;  %824 = vpow2.f32 %v404_v12  ;;  %v414_v16 = vmul.f32 1.442695, %v400_v13 }
 0x293   :  { %v427_v15 = vsel %vm151_vm1, %v1128_v14, 0.0 }
 0x294   :  { %428 = vadd.xlane.f32.xlu2 %v427_v15  ;;  %826 = vpow2.f32 %v414_v16  ;;  %v701_v16 = vld [vmem:[#allocation8 + $0x18] sm:$0xff] }
 0x295   :  { %v387_v17 = vpop.xlane.xlu2 %386  ;;  %v384_v22 = vpop.xlane.xlu1 %383 }
 0x296   :  { %v399_v24 = vsub.f32 %v367_v51, %v387_v17  ;;  %v398_v43 = vsub.f32 %v1116_v53, %v384_v22  ;;  %v700_v17 = vld [vmem:[#allocation8 + $0x10] sm:$0xff]  ;;  %v699_v22 = vld [vmem:[#allocation8 + $0x8] sm:$0xff] }
 0x298   :  { %v1132_v26 = vpop.eup %824  ;;  %v412_v27 = vmul.f32 1.442695, %v399_v24  ;;  %v410_v45 = vmul.f32 1.442695, %v398_v43  ;;  %v698_v24 = vld [vmem:[#allocation8] sm:$0xff] }
 0x299   :  { %v421_v28 = vsel %vm151_vm1, %v1132_v26, 0.0 }
 0x29a   :  { %828 = vpow2.f32 %v412_v27  ;;  %422 = vadd.xlane.f32.xlu1 %v421_v28  ;;  %v1138_v31 = vpop.eup %826 }
 0x29b   :  { %v436_v36 = vsel %vm151_vm1, %v1138_v31, 0.0 }
 0x29d   :  { %v393_v30 = vpop.xlane.xlu1 %392 }
 0x29e   :  { %v401_v32 = vsub.f32 %v369_v57, %v393_v30 }
 0x29f   :  { %812 = vrot.lane.b32.xlu0 %v811_v29, %s988_s20 }
 0x2a0   :  { %v829_v33 = vpop.eup %828  ;;  %v416_v34 = vmul.f32 1.442695, %v401_v32 }
 0x2a1   :  { %v433_v35 = vsel %vm151_vm1, %v829_v33, 0.0 }
 0x2a2   :  { %830 = vpow2.f32 %v416_v34  ;;  %434 = vadd.xlane.f32.xlu2 %v433_v35  ;;  %437 = vadd.xlane.f32.xlu1 %v436_v36  ;;  %v803_v37 = vpop.permute.xlu0 %802 }
 0x2a3   :  { %v805_v38 = vunpack.i.h.bf16 %v803_v37  ;;  %v804_v39 = vunpack.i.l.bf16 %v803_v37 }
 0x2a5   :  { %479 = vmatpush.msra.mxu3 %v804_v39  ;;  %531 = vmatpush.msra.mxu2 %v805_v38  ;;  %v817_v39 = vld [vmem:[%s1187_s5] ss:$0 sm:$0xff] }
 0x2a8   :  { %v831_v21 = vpop.eup %830 }
 0x2a9   :  { %v439_v25 = vsel %vm151_vm1, %v831_v21, 0.0 }
 0x2aa   :  { %v420_v40 = vpop.xlane.xlu2 %419  ;;  %440 = vadd.xlane.f32.xlu1 %v439_v25 }
 0x2ab   :  { %832 = vrcp.f32 %v420_v40 }
 0x2ac   :  { %834 = vpow2.f32 %v410_v45 }
 0x2b1   :  { %v833_v41 = vpop.eup %832 }
 0x2b2   :  { %v450_v42 = vmul.f32 %v833_v41, %v819_v63  ;;  %v835_v46 = vpop.eup %834 }
 0x2b3   :  { %v430_v47 = vsel %vm151_vm1, %v835_v46, 0.0 }
 0x2b4   :  { %777 = vmatmul.msk.f32.vlgmr.msra.gmra.mxu3 %vm151_vm1, %v450_v42 }
 0x2ba   :  { %807 = vrot.lane.b32.xlu2 %v806_v44, %s988_s20 }
 0x2c2   :  { %562 = vrot.lane.b32.xlu2 %v1058_v18, %s988_s20 }
 0x2c3   :  { %640 = vrot.lane.b32.xlu1 %v1078_v23, %s988_s20 }
 0x2c9   :  { %431 = vadd.xlane.f32.xlu0 %v430_v47 }
 0x2fe   :  { %v426_v48 = vpop.xlane.xlu0 %425 }
 0x2ff   :  { %836 = vrcp.f32 %v426_v48 }
 0x305   :  { %v837_v49 = vpop.eup %836 }
 0x306   :  { %v452_v50 = vmul.f32 %v837_v49, %v821_v6 }
 0x307   :  { %v429_v19 = vpop.xlane.xlu2 %428 }
 0x308   :  { %779 = vmatmul.msk.f32.vlgmr.msra.gmra.mxu2 %vm151_vm1, %v452_v50  ;;  %838 = vrcp.f32 %v429_v19 }
 0x30d   :  { %v423_v20 = vpop.xlane.xlu1 %422 }
 0x30e   :  { %840 = vrcp.f32 %v423_v20  ;;  %v839_v23 = vpop.eup %838 }
 0x30f   :  { %v453_v60 = vmul.f32 %v839_v23, %v1128_v14 }
 0x311   :  { %v813_v51 = vpop.permute.xlu0 %812 }
 0x312   :  { %v814_v52 = vunpack.i.l.bf16 %v813_v51  ;;  %v815_v62 = vunpack.i.h.bf16 %v813_v51 }
 0x314   :  { %609 = vmatpush.msrb.mxu2 %v814_v52  ;;  %v841_v53 = vpop.eup %840 }
 0x315   :  { %v435_v18 = vpop.xlane.xlu2 %434  ;;  %v438_v54 = vpop.xlane.xlu1 %437  ;;  %v451_v61 = vmul.f32 %v841_v53, %v1132_v26 }
 0x316   :  { %842 = vrcp.f32 %v435_v18 }
 0x317   :  { %844 = vrcp.f32 %v438_v54 }
 0x31c   :  { %v843_v55 = vpop.eup %842 }
 0x31d   :  { %v455_v56 = vmul.f32 %v843_v55, %v829_v33  ;;  %v808_v57 = vpop.permute.xlu2 %807  ;;  %v845_v63 = vpop.eup %844 }
 0x31e   :  { %v810_v58 = vunpack.i.h.bf16 %v808_v57  ;;  %v809_v59 = vunpack.i.l.bf16 %v808_v57  ;;  %v456_v1 = vmul.f32 %v845_v63, %v1138_v31  ;;  %v441_v2 = vpop.xlane.xlu1 %440 }
 0x31f   :  { %782 = vmatmul.msk.f32.vlgmr.msrb.gmra.mxu2 %vm151_vm1, %v455_v56  ;;  %846 = vrcp.f32 %v441_v2 }
 0x320   :  { %505 = vmatpush.msra.mxu1 %v810_v58  ;;  %557 = vmatpush.msrb.mxu3 %v809_v59 }
 0x321   :  { %778 = vmatmul.msk.f32.vlgmr.msra.gmra.mxu1 %vm151_vm1, %v451_v61  ;;  %780 = vmatmul.msk.f32.vlgmr.msrb.gmra.mxu3 %vm151_vm1, %v453_v60 }
 0x322   :  { %635 = vmatpush.msra.mxu3 %v815_v62 }
 0x325   :  { %v563_v0 = vpop.permute.xlu2 %562  ;;  %v847_v3 = vpop.eup %846 }
 0x326   :  { %583 = vmatpush.msrb.mxu1 %v563_v0  ;;  %v457_v5 = vmul.f32 %v847_v3, %v831_v21 }
 0x328   :  { %725 = vmatpush.msra.mxu1 %v701_v16 }
 0x329   :  { %783 = vmatmul.msk.f32.vlgmr.msra.gmra.mxu3 %vm151_vm1, %v456_v1 }
 0x32a   :  { %726 = vmatpush.msra.mxu1 %v700_v17 }
 0x32c   :  { %727 = vmatpush.msra.mxu1 %v699_v22 }
 0x32e   :  { %728 = vmatpush.msra.mxu1 %v698_v24 }
 0x335   :  { %v641_v4 = vpop.permute.xlu1 %640 }
 0x336   :  { %661 = vmatpush.msrb.mxu0 %v641_v4 }
 0x337   :  { %784 = vmatmul.msk.f32.vlgmr.msrb.gmra.mxu0 %vm151_vm1, %v457_v5  ;;  %v481_v10 = vpop.f32.mrf.mxu3 }
 0x33c   :  { %v432_v6 = vpop.xlane.xlu0 %431 }
 0x33d   :  { %848 = vrcp.f32 %v432_v6 }
 0x343   :  { %v849_v7 = vpop.eup %848 }
 0x344   :  { %v454_v8 = vmul.f32 %v849_v7, %v835_v46 }
 0x346   :  { %781 = vmatmul.msk.f32.vlgmr.msrb.gmra.mxu1 %vm151_vm1, %v454_v8 }
 0x38b   :  { %v533_v9 = vpop.f32.mrf.mxu2 }
 0x38c   :  { %676 = vrot.lane.b32.xlu1 %v533_v9, %s989_s21 }
 0x39e   :  { %v507_v11 = vpop.f32.mrf.mxu1 }
 0x39f   :  { %668 = vrot.lane.b32.xlu2 %v507_v11, %s980_s30 }
 0x3a2   :  { %v611_v12 = vpop.f32.mrf.mxu2 }
 0x3a3   :  { %670 = vrot.lane.b32.xlu1 %v611_v12, %s980_s30 }
 0x3a4   :  { %v559_v13 = vpop.f32.mrf.mxu3 }
 0x3a7   :  { %684 = vrot.lane.b32.xlu2 %v559_v13, %s990_s22 }
 0x3ac   :  { %v637_v14 = vpop.f32.mrf.mxu3 }
 0x3af   :  { %678 = vrot.lane.b32.xlu2 %v637_v14, %s989_s21 }
 0x3b4   :  { %v663_v15 = vpop.f32.mrf.mxu0 }
 0x3b5   :  { %686 = vrot.lane.b32.xlu1 %v663_v15, %s990_s22 }
 0x3c3   :  { %v585_v33 = vpop.f32.mrf.mxu1 }
 0x3f9   :  { %v669_v26 = vpop.permute.xlu2 %668 }
 0x3fa   :  { %v690_v28 = vsel %vm151_vm1, %v481_v10, %v669_v26 }
 0x3fe   :  { %v677_v27 = vpop.permute.xlu1 %676 }
 0x3ff   :  { %v693_v29 = vsel %vm692_vm4, %v690_v28, %v677_v27 }
 0x401   :  { %v685_v30 = vpop.permute.xlu2 %684 }
 0x402   :  { %v696_v31 = vsel %vm695_vm5, %v693_v29, %v685_v30 }
 0x403   :  { %785 = vmatmul.msk.f32.vlgmr.msra.gmra.mxu1 %vm706_vm6, %v696_v31 }
 0x409   :  { %v679_v35 = vpop.permute.xlu2 %678 }
 0x415   :  { %v671_v32 = vpop.permute.xlu1 %670 }
 0x416   :  { %v691_v34 = vsel %vm151_vm1, %v585_v33, %v671_v32 }
 0x417   :  { %v694_v37 = vsel %vm692_vm4, %v691_v34, %v679_v35 }
 0x427   :  { %v687_v36 = vpop.permute.xlu1 %686 }
 0x428   :  { %v697_v38 = vsel %vm695_vm5, %v694_v37, %v687_v36 }
 0x429   :  { %786 = vmatmul.msk.f32.gmra.mxu1 %vm706_vm6, %v697_v38 }
 0x480   :  { %v730_v21 = vpop.f32.mrf.mxu1 }
 0x481   :  { %v731_v25 = vadd.f32 %v817_v39, %v730_v21 }
 0x483   :  { %736 = vst.msk [vmem:[#allocation10] sm:$0xff] %vm706_vm6, %v731_v25 }
 0x4a6   :  { %v733_v40 = vpop.f32.mrf.mxu1 }
 0x4a7   :  { %v734_v41 = vadd.f32 %v817_v39, %v733_v40 }
 0x4a9   :  { %737 = vst.msk [vmem:[#allocation10 + $0x8] sm:$0xff] %vm706_vm6, %v734_v41 }
 0x4aa   :  { %750 = dma.vmem_to_hbm [thread:$0]  %s743_s26, 256, %s745_s7, [#allocation4], %s979_s29, %s979_s29, %s980_s30  }
 0x4ab   :  { %976 = dma.done.wait [#allocation4], 256  }
 0x4ac   :  { %977 = vsyncadd [#allocation4], 4294967040 }
 0x4ad   :  { %755 = vsyncpa [#allocation3], 1 }
 0x4ae   :  { %756 = vsyncpa [#allocation6], 1 }
 0x4af   :  { %757 = vsyncpa [#allocation9], 1 }
 0x4b0   :  { %758 = vsyncpa [#allocation4], 1 }

</bundles_post_ra>
